<compile_context>
chip_gen: v5e
topology: v5e:2x2
jax: 0.10.0
libtpu: 0.0.40
codegen_flags: <defaults>
</compile_context>

<pallas_src>
import functools

import jax
import jax.numpy as jnp
from jax.experimental import pallas as pl
from jax.experimental.pallas import tpu as pltpu

EPS = 1e-5
NEG_SLOPE = 0.01          # F.leaky_relu default
K_IN = 44                 # raw input feature count
K_PAD = 128               # lane-dense padded width for the fc1 contraction


def _chip_generation() -> int:
    """Best-effort TPU generation (5, 6, 7, ...); 0 if unknown."""
    try:
        kind = jax.devices()[0].device_kind.lower()
    except Exception:
        return 0
    for g in (7, 6, 5, 4):
        if f"v{g}" in kind:
            return g
    return 0


def _vmem_limit_bytes(batch: int) -> int:
    """Scoped-VMEM limit sized from the batch footprint, capped by physical VMEM
    (64 MiB/TC on v7x, 128 MiB on v5e/v6e)."""
    try:
        cap = int(pltpu.get_tpu_info().vmem_capacity_bytes)
    except Exception:
        cap = 64 * 1024 * 1024
    need = batch * 8 * 1024 + (4 << 20)        # ~3 KB/row live state + margin
    return int(min(max(need, 16 << 20), int(cap * 0.85)))


def _bn_lrelu(h, gamma, beta, inv_b, act_dtype):
    """Train-mode BatchNorm1d (one-pass stats, fused affine) + leaky_relu.

    Stats stay f32; the affine/activation epilogue runs in `act_dtype`
    (bf16 on v6e/v7x whose VALU is bf16-native, f32 on v5e)."""
    s = jnp.sum(h, axis=0, keepdims=True)
    ss = jnp.sum(h * h, axis=0, keepdims=True)
    mean = s * inv_b
    var = jnp.maximum(ss * inv_b - mean * mean, 0.0)   # clamp one-pass cancellation
    scale = gamma * jax.lax.rsqrt(var + EPS)           # EUP rsqrt (free slot)
    shift = beta - mean * scale
    ha = h.astype(act_dtype)
    hn = ha * scale.astype(act_dtype) + shift.astype(act_dtype)
    return jnp.maximum(hn, NEG_SLOPE * hn)             # single VPU max


def mlp_kernel(x_ref,
               w1_ref, g1_ref, be1_ref,
               w2_ref, g2_ref, be2_ref,
               w3_ref, g3_ref, be3_ref,
               w4_ref, b4_ref,
               o_ref,
               xpad_ref,
               *, bf16_epilogue: bool):
    act_dt = jnp.bfloat16 if bf16_epilogue else jnp.float32
    inv_b = 1.0 / x_ref.shape[0]

    # Zero-pad x 44 -> 128 lanes into VMEM scratch (zero rows of the pre-padded
    # w1 keep the result exact); keeps every MXU pass lane-aligned.
    xpad_ref[...] = jnp.zeros_like(xpad_ref)
    xpad_ref[:, :K_IN] = x_ref[...].astype(jnp.bfloat16)

    # fc1 (bias cancelled by train-mode BN) -> bn1 -> leaky_relu
    h = jnp.dot(xpad_ref[...], w1_ref[...], preferred_element_type=jnp.float32)
    h = _bn_lrelu(h, g1_ref[...], be1_ref[...], inv_b, act_dt)

    # fc2 -> bn2 -> leaky_relu   (bf16 MXU operands, f32 accumulate)
    h = jnp.dot(h.astype(jnp.bfloat16), w2_ref[...],
                preferred_element_type=jnp.float32)
    h = _bn_lrelu(h, g2_ref[...], be2_ref[...], inv_b, act_dt)

    # fc3 -> bn3 -> leaky_relu
    h = jnp.dot(h.astype(jnp.bfloat16), w3_ref[...],
                preferred_element_type=jnp.float32)
    h = _bn_lrelu(h, g3_ref[...], be3_ref[...], inv_b, act_dt)

    # fc4 (out_features=1): VPU multiply + lane reduce beats an N=1 MXU pass.
    logits = jnp.sum(h.astype(jnp.float32) * w4_ref[...], axis=1,
                     keepdims=True) + b4_ref[...]
    o_ref[...] = jax.nn.sigmoid(logits)


def prepare_params(params):
    """One-time parameter prep (pad / cast / reshape) hoisted out of the
    per-call path so each forward only handles x."""
    return {
        "w1": jnp.pad(params["w1"],
                      ((0, K_PAD - K_IN), (0, 0))).astype(jnp.bfloat16),
        "w2": params["w2"].astype(jnp.bfloat16),
        "w3": params["w3"].astype(jnp.bfloat16),
        "w4": params["w4"].reshape(1, -1),     # (1, 64) row, stays f32 (VPU path)
        "b4": params["b4"],
        "g1": params["g1"], "be1": params["be1"],
        "g2": params["g2"], "be2": params["be2"],
        "g3": params["g3"], "be3": params["be3"],
    }


def custom_ann_forward(x, prepped, *, bf16_epilogue=None):
    """x: (B, 44) float32 (raw, unpadded).  prepped: output of prepare_params.

    Note: for real throughput, batch requests to B >= ~128 (v5e) / ~256
    (v6e/v7x); at tiny B the call is launch/DMA-latency bound."""
    B, k = x.shape
    assert k == K_IN, (B, k)
    if bf16_epilogue is None:
        bf16_epilogue = _chip_generation() >= 6   # bf16 VALU on v6e/v7x only

    args = (
        x,
        prepped["w1"], prepped["g1"], prepped["be1"],
        prepped["w2"], prepped["g2"], prepped["be2"],
        prepped["w3"], prepped["g3"], prepped["be3"],
        prepped["w4"], prepped["b4"],
    )
    vmem = pl.BlockSpec(memory_space=pltpu.MemorySpace.VMEM)
    kernel = functools.partial(mlp_kernel, bf16_epilogue=bf16_epilogue)
    return pl.pallas_call(
        kernel,
        out_shape=jax.ShapeDtypeStruct((B, 1), jnp.float32),
        in_specs=[vmem] * len(args),
        out_specs=vmem,
        scratch_shapes=[pltpu.VMEM((B, K_PAD), jnp.bfloat16)],
        compiler_params=pltpu.CompilerParams(
            vmem_limit_bytes=_vmem_limit_bytes(B)),
    )(*args)


def init_params(key):
    """Mirror nn.Linear default init (uniform +/- 1/sqrt(fan_in)) and
    BatchNorm1d defaults (gamma=1, beta=0)."""
    dims = [(44, 256), (256, 128), (128, 64), (64, 1)]
    params = {}
    keys = jax.random.split(key, 2 * len(dims))
    for i, (fan_in, fan_out) in enumerate(dims, start=1):
        bound = 1.0 / jnp.sqrt(float(fan_in))
        params[f"w{i}"] = jax.random.uniform(
            keys[2 * (i - 1)], (fan_in, fan_out), jnp.float32, -bound, bound)
        params[f"b{i}"] = jax.random.uniform(
            keys[2 * (i - 1) + 1], (1, fan_out), jnp.float32, -bound, bound)
        if i <= 3:  # bn1, bn2, bn3
            params[f"g{i}"] = jnp.ones((1, fan_out), jnp.float32)
            params[f"be{i}"] = jnp.zeros((1, fan_out), jnp.float32)
    return params


def reference_forward_f32(x, p):
    """PyTorch-faithful all-f32 reference (keeps the fc1-3 biases BN cancels)."""
    def bn_lrelu(h, g, be):
        m = h.mean(0, keepdims=True)
        v = ((h - m) ** 2).mean(0, keepdims=True)
        hn = (h - m) / jnp.sqrt(v + EPS) * g + be
        return jnp.where(hn >= 0, hn, NEG_SLOPE * hn)

    h = bn_lrelu(x @ p["w1"] + p["b1"], p["g1"], p["be1"])
    h = bn_lrelu(h @ p["w2"] + p["b2"], p["g2"], p["be2"])
    h = bn_lrelu(h @ p["w3"] + p["b3"], p["g3"], p["be3"])
    return jax.nn.sigmoid(h @ p["w4"] + p["b4"])


def reference_forward_kernel_precision(x, p, bf16_epilogue):
    """Plain-JAX mirror of the kernel's exact math (bf16 MXU operands, f32
    accumulate, one-pass BN stats, generation-dependent epilogue dtype,
    fc1-3 biases dropped)."""
    act_dt = jnp.bfloat16 if bf16_epilogue else jnp.float32
    inv_b = 1.0 / x.shape[0]
    xb = x.astype(jnp.bfloat16)
    h = _bn_lrelu(jnp.dot(xb, p["w1"].astype(jnp.bfloat16),
                          preferred_element_type=jnp.float32),
                  p["g1"], p["be1"], inv_b, act_dt)
    h = _bn_lrelu(jnp.dot(h.astype(jnp.bfloat16), p["w2"].astype(jnp.bfloat16),
                          preferred_element_type=jnp.float32),
                  p["g2"], p["be2"], inv_b, act_dt)
    h = _bn_lrelu(jnp.dot(h.astype(jnp.bfloat16), p["w3"].astype(jnp.bfloat16),
                          preferred_element_type=jnp.float32),
                  p["g3"], p["be3"], inv_b, act_dt)
    logits = jnp.sum(h.astype(jnp.float32) * p["w4"].reshape(1, -1),
                     axis=1, keepdims=True) + p["b4"]
    return jax.nn.sigmoid(logits)


if __name__ == "__main__":
    key = jax.random.PRNGKey(0)
    k_x, k_p = jax.random.split(key)

    B = 8  # small demo batch (real deployments should batch to >= ~256)
    x = jax.random.normal(k_x, (B, K_IN), jnp.float32)
    params = init_params(k_p)
    prepped = jax.block_until_ready(prepare_params(params))   # one-time prep

    bf16_epi = _chip_generation() >= 6
    out = jax.block_until_ready(
        custom_ann_forward(x, prepped, bf16_epilogue=bf16_epi))
    assert out.shape == (B, 1), out.shape

    # Exact-policy check: a reference that mirrors the kernel's precision.
    ref_exact = reference_forward_kernel_precision(x, params, bf16_epi)
    tol = 2e-2 if bf16_epi else 2e-3
    assert jnp.allclose(out, ref_exact, atol=tol, rtol=1e-2), (out, ref_exact)

    # Sanity band against the PyTorch-faithful f32 reference (bf16 MXU / epilogue
    # introduce only a small, sigmoid-compressed deviation).
    ref_f32 = reference_forward_f32(x, params)
    assert jnp.allclose(out, ref_f32, atol=6e-2), (out, ref_f32)

    print("KERNEL_OK")
</pallas_src>

<mosaic_0001>
module attributes {stable_mosaic.version = 11 : i64} {
  func.func @mlp_kernel(%arg0: memref<8x44xf32, #tpu.memory_space<vmem>>, %arg1: memref<128x256xbf16, #tpu.memory_space<vmem>>, %arg2: memref<1x256xf32, #tpu.memory_space<vmem>>, %arg3: memref<1x256xf32, #tpu.memory_space<vmem>>, %arg4: memref<256x128xbf16, #tpu.memory_space<vmem>>, %arg5: memref<1x128xf32, #tpu.memory_space<vmem>>, %arg6: memref<1x128xf32, #tpu.memory_space<vmem>>, %arg7: memref<128x64xbf16, #tpu.memory_space<vmem>>, %arg8: memref<1x64xf32, #tpu.memory_space<vmem>>, %arg9: memref<1x64xf32, #tpu.memory_space<vmem>>, %arg10: memref<1x64xf32, #tpu.memory_space<vmem>>, %arg11: memref<1x1xf32, #tpu.memory_space<vmem>>, %arg12: memref<8x1xf32, #tpu.memory_space<vmem>>, %arg13: memref<8x128xbf16, #tpu.memory_space<vmem>>) attributes {dimension_semantics = [], scalar_prefetch = 0 : i64, scratch_operands = 1 : i64, tpu.core_type = #tpu.core_type<tc>} {
    %cst = arith.constant 0.000000e+00 : bf16
    %0 = vector.broadcast %cst : bf16 to vector<8x128xbf16>
    %c0 = arith.constant 0 : index
    %c0_0 = arith.constant 0 : index
    %1 = vector.load %arg13[%c0, %c0_0] : memref<8x128xbf16, #tpu.memory_space<vmem>>, vector<8x128xbf16>
    tpu.vector_store %arg13[%c0, %c0_0], %0 {strides = array<i32>} : memref<8x128xbf16, #tpu.memory_space<vmem>>, vector<8x128xbf16>,
    %c0_1 = arith.constant 0 : index
    %c0_2 = arith.constant 0 : index
    %2 = vector.load %arg0[%c0_1, %c0_2] : memref<8x44xf32, #tpu.memory_space<vmem>>, vector<8x44xf32>
    %3 = arith.truncf %2 : vector<8x44xf32> to vector<8x44xbf16>
    %c0_3 = arith.constant 0 : index
    %c0_4 = arith.constant 0 : index
    %4 = vector.load %arg13[%c0_3, %c0_4] : memref<8x128xbf16, #tpu.memory_space<vmem>>, vector<8x44xbf16>
    tpu.vector_store %arg13[%c0_3, %c0_4], %3 {strides = array<i32>} : memref<8x128xbf16, #tpu.memory_space<vmem>>, vector<8x44xbf16>,
    %c0_5 = arith.constant 0 : index
    %c0_6 = arith.constant 0 : index
    %5 = vector.load %arg13[%c0_5, %c0_6] : memref<8x128xbf16, #tpu.memory_space<vmem>>, vector<8x128xbf16>
    %c0_7 = arith.constant 0 : index
    %c0_8 = arith.constant 0 : index
    %6 = vector.load %arg1[%c0_7, %c0_8] : memref<128x256xbf16, #tpu.memory_space<vmem>>, vector<128x256xbf16>
    %cst_9 = arith.constant dense<0.000000e+00> : vector<8x256xf32>
    %7 = tpu.matmul %5, %6, %cst_9 {dimension_numbers = #tpu.dot_dimension_numbers<[1], [0], [0], [1], [0, 0, 1, 1], [], []>} : vector<8x128xbf16>, vector<128x256xbf16>, vector<8x256xf32> -> vector<8x256xf32>
    %c0_10 = arith.constant 0 : index
    %c0_11 = arith.constant 0 : index
    %8 = vector.load %arg2[%c0_10, %c0_11] : memref<1x256xf32, #tpu.memory_space<vmem>>, vector<1x256xf32>
    %c0_12 = arith.constant 0 : index
    %c0_13 = arith.constant 0 : index
    %9 = vector.load %arg3[%c0_12, %c0_13] : memref<1x256xf32, #tpu.memory_space<vmem>>, vector<1x256xf32>
    %cst_14 = arith.constant dense<0.000000e+00> : vector<256xf32>
    %10 = vector.multi_reduction <add>, %7, %cst_14 [0] : vector<8x256xf32> to vector<256xf32>
    %11 = vector.shape_cast %10 : vector<256xf32> to vector<1x256xf32>
    %12 = arith.mulf %7, %7 : vector<8x256xf32>
    %cst_15 = arith.constant dense<0.000000e+00> : vector<256xf32>
    %13 = vector.multi_reduction <add>, %12, %cst_15 [0] : vector<8x256xf32> to vector<256xf32>
    %14 = vector.shape_cast %13 : vector<256xf32> to vector<1x256xf32>
    %cst_16 = arith.constant 1.250000e-01 : f32
    %15 = vector.broadcast %cst_16 : f32 to vector<1x256xf32>
    %16 = arith.mulf %11, %15 : vector<1x256xf32>
    %cst_17 = arith.constant 1.250000e-01 : f32
    %17 = vector.broadcast %cst_17 : f32 to vector<1x256xf32>
    %18 = arith.mulf %14, %17 : vector<1x256xf32>
    %19 = arith.mulf %16, %16 : vector<1x256xf32>
    %20 = arith.subf %18, %19 : vector<1x256xf32>
    %cst_18 = arith.constant 0.000000e+00 : f32
    %21 = vector.broadcast %cst_18 : f32 to vector<1x256xf32>
    %22 = arith.maximumf %20, %21 : vector<1x256xf32>
    %cst_19 = arith.constant 9.99999974E-6 : f32
    %23 = vector.broadcast %cst_19 : f32 to vector<1x256xf32>
    %24 = arith.addf %22, %23 : vector<1x256xf32>
    %25 = math.rsqrt %24 : vector<1x256xf32>
    %26 = arith.mulf %8, %25 : vector<1x256xf32>
    %27 = arith.mulf %16, %26 : vector<1x256xf32>
    %28 = arith.subf %9, %27 : vector<1x256xf32>
    %29 = vector.broadcast %26 : vector<1x256xf32> to vector<8x256xf32>
    %30 = arith.mulf %7, %29 : vector<8x256xf32>
    %31 = vector.broadcast %28 : vector<1x256xf32> to vector<8x256xf32>
    %32 = arith.addf %30, %31 : vector<8x256xf32>
    %cst_20 = arith.constant 0.00999999977 : f32
    %33 = vector.broadcast %cst_20 : f32 to vector<8x256xf32>
    %34 = arith.mulf %33, %32 : vector<8x256xf32>
    %35 = arith.maximumf %32, %34 : vector<8x256xf32>
    %36 = arith.truncf %35 : vector<8x256xf32> to vector<8x256xbf16>
    %c0_21 = arith.constant 0 : index
    %c0_22 = arith.constant 0 : index
    %37 = vector.load %arg4[%c0_21, %c0_22] : memref<256x128xbf16, #tpu.memory_space<vmem>>, vector<256x128xbf16>
    %cst_23 = arith.constant dense<0.000000e+00> : vector<8x128xf32>
    %38 = tpu.matmul %36, %37, %cst_23 {dimension_numbers = #tpu.dot_dimension_numbers<[1], [0], [0], [1], [0, 0, 1, 1], [], []>} : vector<8x256xbf16>, vector<256x128xbf16>, vector<8x128xf32> -> vector<8x128xf32>
    %c0_24 = arith.constant 0 : index
    %c0_25 = arith.constant 0 : index
    %39 = vector.load %arg5[%c0_24, %c0_25] : memref<1x128xf32, #tpu.memory_space<vmem>>, vector<1x128xf32>
    %c0_26 = arith.constant 0 : index
    %c0_27 = arith.constant 0 : index
    %40 = vector.load %arg6[%c0_26, %c0_27] : memref<1x128xf32, #tpu.memory_space<vmem>>, vector<1x128xf32>
    %cst_28 = arith.constant dense<0.000000e+00> : vector<128xf32>
    %41 = vector.multi_reduction <add>, %38, %cst_28 [0] : vector<8x128xf32> to vector<128xf32>
    %42 = vector.shape_cast %41 : vector<128xf32> to vector<1x128xf32>
    %43 = arith.mulf %38, %38 : vector<8x128xf32>
    %cst_29 = arith.constant dense<0.000000e+00> : vector<128xf32>
    %44 = vector.multi_reduction <add>, %43, %cst_29 [0] : vector<8x128xf32> to vector<128xf32>
    %45 = vector.shape_cast %44 : vector<128xf32> to vector<1x128xf32>
    %cst_30 = arith.constant 1.250000e-01 : f32
    %46 = vector.broadcast %cst_30 : f32 to vector<1x128xf32>
    %47 = arith.mulf %42, %46 : vector<1x128xf32>
    %cst_31 = arith.constant 1.250000e-01 : f32
    %48 = vector.broadcast %cst_31 : f32 to vector<1x128xf32>
    %49 = arith.mulf %45, %48 : vector<1x128xf32>
    %50 = arith.mulf %47, %47 : vector<1x128xf32>
    %51 = arith.subf %49, %50 : vector<1x128xf32>
    %cst_32 = arith.constant 0.000000e+00 : f32
    %52 = vector.broadcast %cst_32 : f32 to vector<1x128xf32>
    %53 = arith.maximumf %51, %52 : vector<1x128xf32>
    %cst_33 = arith.constant 9.99999974E-6 : f32
    %54 = vector.broadcast %cst_33 : f32 to vector<1x128xf32>
    %55 = arith.addf %53, %54 : vector<1x128xf32>
    %56 = math.rsqrt %55 : vector<1x128xf32>
    %57 = arith.mulf %39, %56 : vector<1x128xf32>
    %58 = arith.mulf %47, %57 : vector<1x128xf32>
    %59 = arith.subf %40, %58 : vector<1x128xf32>
    %60 = vector.broadcast %57 : vector<1x128xf32> to vector<8x128xf32>
    %61 = arith.mulf %38, %60 : vector<8x128xf32>
    %62 = vector.broadcast %59 : vector<1x128xf32> to vector<8x128xf32>
    %63 = arith.addf %61, %62 : vector<8x128xf32>
    %cst_34 = arith.constant 0.00999999977 : f32
    %64 = vector.broadcast %cst_34 : f32 to vector<8x128xf32>
    %65 = arith.mulf %64, %63 : vector<8x128xf32>
    %66 = arith.maximumf %63, %65 : vector<8x128xf32>
    %67 = arith.truncf %66 : vector<8x128xf32> to vector<8x128xbf16>
    %c0_35 = arith.constant 0 : index
    %c0_36 = arith.constant 0 : index
    %68 = vector.load %arg7[%c0_35, %c0_36] : memref<128x64xbf16, #tpu.memory_space<vmem>>, vector<128x64xbf16>
    %cst_37 = arith.constant dense<0.000000e+00> : vector<8x64xf32>
    %69 = tpu.matmul %67, %68, %cst_37 {dimension_numbers = #tpu.dot_dimension_numbers<[1], [0], [0], [1], [0, 0, 1, 1], [], []>} : vector<8x128xbf16>, vector<128x64xbf16>, vector<8x64xf32> -> vector<8x64xf32>
    %c0_38 = arith.constant 0 : index
    %c0_39 = arith.constant 0 : index
    %70 = vector.load %arg8[%c0_38, %c0_39] : memref<1x64xf32, #tpu.memory_space<vmem>>, vector<1x64xf32>
    %c0_40 = arith.constant 0 : index
    %c0_41 = arith.constant 0 : index
    %71 = vector.load %arg9[%c0_40, %c0_41] : memref<1x64xf32, #tpu.memory_space<vmem>>, vector<1x64xf32>
    %cst_42 = arith.constant dense<0.000000e+00> : vector<64xf32>
    %72 = vector.multi_reduction <add>, %69, %cst_42 [0] : vector<8x64xf32> to vector<64xf32>
    %73 = vector.shape_cast %72 : vector<64xf32> to vector<1x64xf32>
    %74 = arith.mulf %69, %69 : vector<8x64xf32>
    %cst_43 = arith.constant dense<0.000000e+00> : vector<64xf32>
    %75 = vector.multi_reduction <add>, %74, %cst_43 [0] : vector<8x64xf32> to vector<64xf32>
    %76 = vector.shape_cast %75 : vector<64xf32> to vector<1x64xf32>
    %cst_44 = arith.constant 1.250000e-01 : f32
    %77 = vector.broadcast %cst_44 : f32 to vector<1x64xf32>
    %78 = arith.mulf %73, %77 : vector<1x64xf32>
    %cst_45 = arith.constant 1.250000e-01 : f32
    %79 = vector.broadcast %cst_45 : f32 to vector<1x64xf32>
    %80 = arith.mulf %76, %79 : vector<1x64xf32>
    %81 = arith.mulf %78, %78 : vector<1x64xf32>
    %82 = arith.subf %80, %81 : vector<1x64xf32>
    %cst_46 = arith.constant 0.000000e+00 : f32
    %83 = vector.broadcast %cst_46 : f32 to vector<1x64xf32>
    %84 = arith.maximumf %82, %83 : vector<1x64xf32>
    %cst_47 = arith.constant 9.99999974E-6 : f32
    %85 = vector.broadcast %cst_47 : f32 to vector<1x64xf32>
    %86 = arith.addf %84, %85 : vector<1x64xf32>
    %87 = math.rsqrt %86 : vector<1x64xf32>
    %88 = arith.mulf %70, %87 : vector<1x64xf32>
    %89 = arith.mulf %78, %88 : vector<1x64xf32>
    %90 = arith.subf %71, %89 : vector<1x64xf32>
    %91 = vector.broadcast %88 : vector<1x64xf32> to vector<8x64xf32>
    %92 = arith.mulf %69, %91 : vector<8x64xf32>
    %93 = vector.broadcast %90 : vector<1x64xf32> to vector<8x64xf32>
    %94 = arith.addf %92, %93 : vector<8x64xf32>
    %cst_48 = arith.constant 0.00999999977 : f32
    %95 = vector.broadcast %cst_48 : f32 to vector<8x64xf32>
    %96 = arith.mulf %95, %94 : vector<8x64xf32>
    %97 = arith.maximumf %94, %96 : vector<8x64xf32>
    %c0_49 = arith.constant 0 : index
    %c0_50 = arith.constant 0 : index
    %98 = vector.load %arg10[%c0_49, %c0_50] : memref<1x64xf32, #tpu.memory_space<vmem>>, vector<1x64xf32>
    %99 = vector.broadcast %98 : vector<1x64xf32> to vector<8x64xf32>
    %100 = arith.mulf %97, %99 : vector<8x64xf32>
    %cst_51 = arith.constant dense<0.000000e+00> : vector<8xf32>
    %101 = vector.multi_reduction <add>, %100, %cst_51 [1] : vector<8x64xf32> to vector<8xf32>
    %102 = vector.shape_cast %101 : vector<8xf32> to vector<8x1xf32>
    %c0_52 = arith.constant 0 : index
    %c0_53 = arith.constant 0 : index
    %103 = vector.load %arg11[%c0_52, %c0_53] : memref<1x1xf32, #tpu.memory_space<vmem>>, vector<1x1xf32>
    %104 = vector.broadcast %103 : vector<1x1xf32> to vector<8x1xf32>
    %105 = arith.addf %102, %104 : vector<8x1xf32>
    %106 = arith.negf %105 : vector<8x1xf32>
    %107 = math.exp %106 : vector<8x1xf32>
    %cst_54 = arith.constant 1.000000e+00 : f32
    %108 = vector.broadcast %cst_54 : f32 to vector<8x1xf32>
    %109 = arith.addf %108, %107 : vector<8x1xf32>
    %110 = arith.divf %108, %109 : vector<8x1xf32>
    %c0_55 = arith.constant 0 : index
    %c0_56 = arith.constant 0 : index
    %111 = vector.load %arg12[%c0_55, %c0_56] : memref<8x1xf32, #tpu.memory_space<vmem>>, vector<8x1xf32>
    tpu.vector_store %arg12[%c0_55, %c0_56], %110 {strides = array<i32>} : memref<8x1xf32, #tpu.memory_space<vmem>>, vector<8x1xf32>,
    return
  }
}

</mosaic_0001>

<bundles_post_ra>
// kernel: tpu_custom_call.1
= control target key start
LH: loop header
LB: loop body
LE: loop exit
PB: predicated region body
PF: predicated region fallthrough
CT: control target
= control target key end

     0   :  { %s1090_s0 = inlined_call_operand.vmem [shape: f32[8,44], index: 0, kind: input, shape index: {}]   ;;  %s1091_s1 = inlined_call_operand.hbm [shape: bf16[128,256], index: 1, kind: input, shape index: {}]   ;;  %s1092_s2 = inlined_call_operand.vmem [shape: f32[1,256], index: 2, kind: input, shape index: {}]   ;;  %s1093_s3 = inlined_call_operand.vmem [shape: f32[1,256], index: 3, kind: input, shape index: {}]   ;;  %s1094_s4 = inlined_call_operand.hbm [shape: bf16[256,128], index: 4, kind: input, shape index: {}]   ;;  %s1095_s5 = inlined_call_operand.vmem [shape: f32[1,128], index: 5, kind: input, shape index: {}]   ;;  %s1096_s6 = inlined_call_operand.vmem [shape: f32[1,128], index: 6, kind: input, shape index: {}]   ;;  %s1097_s7 = inlined_call_operand.vmem [shape: bf16[128,64], index: 7, kind: input, shape index: {}]   ;;  %s1098_s8 = inlined_call_operand.vmem [shape: f32[1,64], index: 8, kind: input, shape index: {}]   ;;  %s1099_s9 = inlined_call_operand.vmem [shape: f32[1,64], index: 9, kind: input, shape index: {}]   ;;  %s1100_s10 = inlined_call_operand.vmem [shape: f32[1,64], index: 10, kind: input, shape index: {}]   ;;  %s1101_s11 = inlined_call_operand.<no memory space> [shape: f32[1,1], index: 11, kind: input, shape index: {}]   ;;  %s1102_s12 = inlined_call_operand.vmem [shape: f32[8,1], index: 12, kind: output, shape index: {}]  }
   0x1   :  { %v17_v0 = vstv %s1101_s11 }
   0x2   :  { %18 = vst [vmem:[#allocation3] sm:$0x1] %v17_v0 }
   0x3   :  { %19 = vsyncpa [#allocation5], 0  ;;  %s27_s25 = sshll.u32 %s1091_s1, 4  ;;  %s28_s25 = int_to_ptr.hbm [resolvable:$true] %s27_s25 }
   0x4   :  { %20 = vsyncpa [#allocation7], 0  ;;  %s936_s26 = smov [#allocation4]   ;;  %s44_s30 = sshll.u32 %s1094_s4, 4  ;;  %s45_s30 = int_to_ptr.hbm [resolvable:$true] %s44_s30 }
   0x5   :  { %s29_s27 = sshll.u32 %s936_s26, 4  ;;  %s937_s13 = smov 128   ;;  %s30_s27 = int_to_ptr.vmem [resolvable:$true] %s29_s27 }
   0x6   :  { %s938_s14 = smov 8   ;;  %s939_s11 = smov [#allocation6]  }
   0x7   :  { %35 = dma.hbm_to_vmem [thread:$0]  %s28_s25, 2048, %s30_s27, [#allocation5], %s937_s13, %s937_s13, %s938_s14  }
   0x8   :  { %s46_s15 = sshll.u32 %s939_s11, 4  ;;  %s940_s16 = smov 64   ;;  %s47_s15 = int_to_ptr.vmem [resolvable:$true] %s46_s15 }
   0x9   :  { %s941_s17 = smov 4  }
   0xa   :  { %52 = dma.hbm_to_vmem [thread:$0]  %s45_s30, 2048, %s47_s15, [#allocation7], %s940_s16, %s940_s16, %s941_s17  }
   0xb   :  { %932 = dma.done.wait [#allocation5], 2048  }
   0xc   :  { %933 = vsyncadd [#allocation5], 4294965248 }
   0xd   :  { %934 = dma.done.wait [#allocation7], 2048  }
   0xe   :  { %935 = vsyncadd [#allocation7], 4294965248  ;;  %v942_v1 = vmov 0   ;;  %v720_v2 = vld [vmem:[#allocation4 + $0x70] sm:$0xf]  ;;  %v77_v24 = vld [vmem:[%s1090_s0] sm:$0xff] }
   0xf   :  { %76 = vst [vmem:[#allocation2] sm:$0xf] %v942_v1  ;;  %v838_v3 = vld [vmem:[#allocation4 + $0x74] sm:$0xf0]  ;;  %v837_v4 = vld [vmem:[#allocation4 + $0x74] sm:$0xf]  ;;  %v78_v26 = vpack.c.bf16 %v77_v24, %v77_v24 }
  0x10   :  { %v721_v5 = vor.u32 %v838_v3, %v720_v2  ;;  %v722_v6 = vld [vmem:[#allocation4 + $0x78] sm:$0xf0]  ;;  %v712_v7 = vld [vmem:[#allocation4 + $0x60] sm:$0xf]  ;;  %v836_v8 = vld [vmem:[#allocation4 + $0x64] sm:$0xf0] }
  0x11   :  { %v725_v9 = vor.u32 %v837_v4, %v722_v6  ;;  %v835_v10 = vld [vmem:[#allocation4 + $0x64] sm:$0xf]  ;;  %v714_v11 = vld [vmem:[#allocation4 + $0x68] sm:$0xf0]  ;;  %v713_v12 = vor.u32 %v836_v8, %v712_v7  ;;  %v704_v14 = vld [vmem:[#allocation4 + $0x50] sm:$0xf] }
  0x12   :  { %178 = vmatpush.bf16.msra.mxu0 %v721_v5  ;;  %v717_v13 = vor.u32 %v835_v10, %v714_v11  ;;  %v834_v15 = vld [vmem:[#allocation4 + $0x54] sm:$0xf0]  ;;  %v833_v16 = vld [vmem:[#allocation4 + $0x54] sm:$0xf]  ;;  %v706_v17 = vld [vmem:[#allocation4 + $0x58] sm:$0xf0] }
  0x13   :  { %191 = vmatpush.bf16.msra.mxu1 %v725_v9  ;;  %v705_v18 = vor.u32 %v834_v15, %v704_v14  ;;  %v709_v19 = vor.u32 %v833_v16, %v706_v17  ;;  %v696_v20 = vld [vmem:[#allocation4 + $0x40] sm:$0xf]  ;;  %v832_v21 = vld [vmem:[#allocation4 + $0x44] sm:$0xf0]  ;;  %v831_v22 = vld [vmem:[#allocation4 + $0x44] sm:$0xf] }
  0x14   :  { %v698_v23 = vld [vmem:[#allocation4 + $0x48] sm:$0xf0]  ;;  %vm79_vm0 = vcmask 355328   ;;  %v697_v25 = vor.u32 %v832_v21, %v696_v20  ;;  %v688_v28 = vld [vmem:[#allocation4 + $0x30] sm:$0xf]  ;;  %v846_v57 = vld [vmem:[#allocation6 + $0x38] sm:$0xff] }
  0x15   :  { %v701_v27 = vor.u32 %v831_v22, %v698_v23  ;;  %v830_v29 = vld [vmem:[#allocation4 + $0x34] sm:$0xf0]  ;;  %v829_v30 = vld [vmem:[#allocation4 + $0x34] sm:$0xf]  ;;  %v690_v31 = vld [vmem:[#allocation4 + $0x38] sm:$0xf0]  ;;  %427 = vmatpush.bf16.msra.mxu2 %v846_v57 }
  0x16   :  { %179 = vmatpush.bf16.msra.mxu0 %v713_v12  ;;  %80 = vst.msk [vmem:[#allocation2] sm:$0xf] %vm79_vm0, %v78_v26  ;;  %v689_v32 = vor.u32 %v830_v29, %v688_v28  ;;  %v693_v33 = vor.u32 %v829_v30, %v690_v31  ;;  %v680_v34 = vld [vmem:[#allocation4 + $0x20] sm:$0xf]  ;;  %v828_v35 = vld [vmem:[#allocation4 + $0x24] sm:$0xf0] }
  0x17   :  { %192 = vmatpush.bf16.msra.mxu1 %v717_v13  ;;  %v827_v36 = vld [vmem:[#allocation4 + $0x24] sm:$0xf]  ;;  %v682_v37 = vld [vmem:[#allocation4 + $0x28] sm:$0xf0]  ;;  %v681_v38 = vor.u32 %v828_v35, %v680_v34  ;;  %v672_v40 = vld [vmem:[#allocation4 + $0x10] sm:$0xf] }
  0x18   :  { %v685_v39 = vor.u32 %v827_v36, %v682_v37  ;;  %v826_v41 = vld [vmem:[#allocation4 + $0x14] sm:$0xf0]  ;;  %v825_v42 = vld [vmem:[#allocation4 + $0x14] sm:$0xf]  ;;  %v674_v43 = vld [vmem:[#allocation4 + $0x18] sm:$0xf0] }
  0x19   :  { %v673_v44 = vor.u32 %v826_v41, %v672_v40  ;;  %v677_v45 = vor.u32 %v825_v42, %v674_v43  ;;  %v664_v46 = vld [vmem:[#allocation4] sm:$0xf]  ;;  %v824_v47 = vld [vmem:[#allocation4 + $0x4] sm:$0xf0]  ;;  %v823_v48 = vld [vmem:[#allocation4 + $0x4] sm:$0xf] }
  0x1a   :  { %180 = vmatpush.bf16.msra.mxu0 %v705_v18  ;;  %v666_v49 = vld [vmem:[#allocation4 + $0x8] sm:$0xf0]  ;;  %v665_v50 = vor.u32 %v824_v47, %v664_v46  ;;  %v854_v58 = vld [vmem:[#allocation6 + $0x78] sm:$0xff]  ;;  %v845_v3 = vld [vmem:[#allocation6 + $0x30] sm:$0xff]  ;;  %vm267_vm6 = vcmask 1040384   ;;  %vm577_vm11 = vcmask 523264  }
  0x1b   :  { %193 = vmatpush.bf16.msra.mxu1 %v709_v19  ;;  %v669_v51 = vor.u32 %v823_v48, %v666_v49  ;;  %440 = vmatpush.bf16.msra.mxu3 %v854_v58  ;;  %v853_v4 = vld [vmem:[#allocation6 + $0x70] sm:$0xff]  ;;  %v844_v15 = vld [vmem:[#allocation6 + $0x28] sm:$0xff]  ;;  %v851_v26 = vld [vmem:[#allocation6 + $0x60] sm:$0xff] }
  0x1c   :  { %428 = vmatpush.bf16.msra.mxu2 %v845_v3  ;;  %v852_v16 = vld [vmem:[#allocation6 + $0x68] sm:$0xff]  ;;  %v842_v34 = vld [vmem:[#allocation6 + $0x18] sm:$0xff]  ;;  %v847_v46 = vld [vmem:[#allocation6 + $0x40] sm:$0xff] }
  0x1d   :  { %v81_v52 = vld [vmem:[#allocation2] sm:$0xf]  ;;  %v840_v43 = vld [vmem:[#allocation6 + $0x8] sm:$0xff] }
  0x1e   :  { %181 = vmatpush.bf16.msra.mxu0 %v697_v25  ;;  %v843_v25 = vld [vmem:[#allocation6 + $0x20] sm:$0xff]  ;;  %v850_v35 = vld [vmem:[#allocation6 + $0x58] sm:$0xff] }
  0x1f   :  { %194 = vmatpush.bf16.msra.mxu1 %v701_v27  ;;  %441 = vmatpush.bf16.msra.mxu3 %v853_v4 }
  0x20   :  { %429 = vmatpush.bf16.msra.mxu2 %v844_v15 }
  0x22   :  { %182 = vmatpush.bf16.msra.mxu0 %v689_v32 }
  0x23   :  { %195 = vmatpush.bf16.msra.mxu1 %v693_v33  ;;  %442 = vmatpush.bf16.msra.mxu3 %v852_v16 }
  0x24   :  { %430 = vmatpush.bf16.msra.mxu2 %v843_v25  ;;  %v858_v25 = vld [vmem:[%s1097_s7 + $0x18] sm:$0xff] }
  0x26   :  { %183 = vmatpush.bf16.msra.mxu0 %v681_v38  ;;  %v841_v38 = vld [vmem:[#allocation6 + $0x10] sm:$0xff] }
  0x27   :  { %196 = vmatpush.bf16.msra.mxu1 %v685_v39  ;;  %443 = vmatpush.bf16.msra.mxu3 %v851_v26  ;;  %v849_v39 = vld [vmem:[#allocation6 + $0x50] sm:$0xff] }
  0x28   :  { %431 = vmatpush.bf16.msra.mxu2 %v842_v34 }
  0x2a   :  { %184 = vmatpush.bf16.msra.mxu0 %v673_v44  ;;  %v848_v44 = vld [vmem:[#allocation6 + $0x48] sm:$0xff] }
  0x2b   :  { %197 = vmatpush.bf16.msra.mxu1 %v677_v45  ;;  %444 = vmatpush.bf16.msra.mxu3 %v850_v35  ;;  %v839_v45 = vld [vmem:[#allocation6] sm:$0xff] }
  0x2c   :  { %432 = vmatpush.bf16.msra.mxu2 %v841_v38 }
  0x2e   :  { %185 = vmatpush.bf16.msra.mxu0 %v665_v50 }
  0x2f   :  { %198 = vmatpush.bf16.msra.mxu1 %v669_v51  ;;  %445 = vmatpush.bf16.msra.mxu3 %v849_v39 }
  0x30   :  { %433 = vmatpush.bf16.msra.mxu2 %v840_v43  ;;  %v855_v43 = vld [vmem:[%s1097_s7] sm:$0xff] }
  0x31   :  { %186 = vmatmul.bf16.vlgmr.msra.gmra.mxu0 %v81_v52 }
  0x32   :  { %199 = vmatmul.bf16.vlgmr.msra.gmra.mxu1 %v81_v52 }
  0x33   :  { %446 = vmatpush.bf16.msra.mxu3 %v848_v44 }
  0x34   :  { %434 = vmatpush.bf16.msra.mxu2 %v839_v45 }
  0x37   :  { %447 = vmatpush.bf16.msra.mxu3 %v847_v46 }
  0xae   :  { %v1020_v53 = vpop.f32.mrf.mxu0 }
  0xaf   :  { %v206_v54 = vrot.slane %v1020_v53, 4  ;;  %v218_v55 = vmul.f32 %v1020_v53, %v1020_v53  ;;  %v1025_v56 = vpop.f32.mrf.mxu1 }
  0xb0   :  { %v212_v59 = vrot.slane %v1025_v56, 4  ;;  %v219_v60 = vmul.f32 %v1025_v56, %v1025_v56 }
  0xb1   :  { %v207_v61 = vadd.f32 %v206_v54, %v1020_v53  ;;  %v220_v62 = vrot.slane %v218_v55, 4 }
  0xb2   :  { %v213_v63 = vadd.f32 %v212_v59, %v1025_v56  ;;  %v226_v0 = vrot.slane %v219_v60, 4 }
  0xb3   :  { %v208_v1 = vrot.slane %v207_v61, 2  ;;  %v221_v2 = vadd.f32 %v220_v62, %v218_v55  ;;  %v204_v62 = vld [vmem:[%s1092_s2] sm:$0x3] }
  0xb4   :  { %v214_v5 = vrot.slane %v213_v63, 2  ;;  %v227_v6 = vadd.f32 %v226_v0, %v219_v60 }
  0xb5   :  { %v209_v7 = vadd.f32 %v208_v1, %v207_v61  ;;  %v222_v8 = vrot.slane %v221_v2, 2 }
  0xb6   :  { %v215_v9 = vadd.f32 %v214_v5, %v213_v63  ;;  %v228_v10 = vrot.slane %v227_v6, 2  ;;  %v189_v11 = vpop.f32.mrf.mxu0 }
  0xb7   :  { %v210_v12 = vrot.slane %v209_v7, 1  ;;  %v223_v13 = vadd.f32 %v222_v8, %v221_v2  ;;  %v202_v14 = vpop.f32.mrf.mxu1 }
  0xb8   :  { %v216_v17 = vrot.slane %v215_v9, 1  ;;  %v229_v18 = vadd.f32 %v228_v10, %v227_v6 }
  0xb9   :  { %v211_v19 = vadd.f32 %v210_v12, %v209_v7  ;;  %v224_v20 = vrot.slane %v223_v13, 1  ;;  %v205_v7 = vld [vmem:[%s1093_s3] sm:$0x3] }
  0xba   :  { %v217_v21 = vadd.f32 %v216_v17, %v215_v9  ;;  %v230_v22 = vrot.slane %v229_v18, 1 }
  0xbb   :  { %v225_v23 = vadd.f32 %v224_v20, %v223_v13  ;;  %v1032_v24 = vmul.f32 0.125, %v211_v19 }
  0xbc   :  { %v231_v27 = vadd.f32 %v230_v22, %v229_v18  ;;  %v233_v28 = vmul.f32 0.125, %v217_v21 }
  0xbd   :  { %v234_v29 = vmul.f32 0.125, %v225_v23  ;;  %v236_v30 = vmul.f32 %v1032_v24, %v1032_v24  ;;  %v862_v23 = vld [vmem:[%s1097_s7 + $0x38] sm:$0xff] }
  0xbe   :  { %v235_v31 = vmul.f32 0.125, %v231_v27  ;;  %v237_v32 = vmul.f32 %v233_v28, %v233_v28  ;;  %562 = vmatpush.bf16.msrb.mxu0 %v862_v23 }
  0xbf   :  { %v238_v33 = vsub.f32 %v234_v29, %v236_v30 }
  0xc0   :  { %v239_v36 = vsub.f32 %v235_v31, %v237_v32  ;;  %v857_v31 = vld [vmem:[%s1097_s7 + $0x10] sm:$0xff] }
  0xc1   :  { %v240_v37 = vmax.f32 %v238_v33, 0.0 }
  0xc2   :  { %v241_v40 = vmax.f32 %v239_v36, 0.0  ;;  %v856_v36 = vld [vmem:[%s1097_s7 + $0x8] sm:$0xff] }
  0xc3   :  { %v242_v41 = vadd.f32 1e-05, %v240_v37 }
  0xc4   :  { %v243_v42 = vadd.f32 1e-05, %v241_v40 }
  0xc5   :  { %872 = vrsqrt.f32 %v242_v41  ;;  %vm250_vm5 = vweird.f32 %v242_v41 }
  0xc6   :  { %874 = vrsqrt.f32 %v243_v42  ;;  %vm260_vm3 = vweird.f32 %v243_v42 }
  0xcb   :  { %v873_v47 = vpop.eup %872 }
  0xcc   :  { %v875_v48 = vpop.eup %874  ;;  %v245_v49 = vmul.f32 %v873_v47, %v242_v41  ;;  %vm251_vm2 = vweird.f32 %v873_v47 }
  0xcd   :  { %v255_v50 = vmul.f32 %v875_v48, %v243_v42  ;;  %vm261_vm1 = vweird.f32 %v875_v48  ;;  %vm252_vm7 = vmor %vm250_vm5, %vm251_vm2  ;;  %vm654_vm2 = vcmask 7168  }
  0xce   :  { %v246_v51 = vmul.f32 %v873_v47, %v245_v49  ;;  %vm262_vm4 = vmor %vm260_vm3, %vm261_vm1 }
  0xcf   :  { %v256_v52 = vmul.f32 %v875_v48, %v255_v50 }
  0xd0   :  { %v247_v54 = vmul.f32 0.5, %v246_v51 }
  0xd1   :  { %v257_v55 = vmul.f32 0.5, %v256_v52 }
  0xd2   :  { %v248_v57 = vsub.f32 1.5, %v247_v54 }
  0xd3   :  { %v258_v58 = vsub.f32 1.5, %v257_v55 }
  0xd4   :  { %v249_v59 = vmul.f32 %v873_v47, %v248_v57 }
  0xd5   :  { %v259_v60 = vmul.f32 %v875_v48, %v258_v58 }
  0xd6   :  { %v253_v0 = vsel %vm252_vm7, %v873_v47, %v249_v59 }
  0xd7   :  { %v263_v61 = vsel %vm262_vm4, %v875_v48, %v259_v60  ;;  %v453_v60 = vld [vmem:[%s1095_s5] sm:$0x1] }
  0xd8   :  { %v266_v63 = vrot.slane %v263_v61, 7 }
  0xda   :  { %v268_v1 = vsel %vm267_vm6, %v253_v0, %v266_v63  ;;  %v454_v0 = vld [vmem:[%s1096_s6] sm:$0x1] }
  0xdb   :  { %v270_v2 = vmul.f32 %v268_v1, %v204_v62 }
  0xdd   :  { %v273_v3 = vperm.slane %v270_v2, 1  ;;  %v272_v4 = vperm.slane %v270_v2, 0 }
  0xdf   :  { %v277_v5 = vmul.f32 %v273_v3, %v233_v28  ;;  %v276_v8 = vmul.f32 %v272_v4, %v1032_v24  ;;  %v285_v11 = vmul.f32 %v273_v3, %v1025_v56  ;;  %v284_v12 = vmul.f32 %v272_v4, %v1020_v53  ;;  %v861_v53 = vld [vmem:[%s1097_s7 + $0x30] sm:$0xff]  ;;  %v860_v56 = vld [vmem:[%s1097_s7 + $0x28] sm:$0xff]  ;;  %v859_v24 = vld [vmem:[%s1097_s7 + $0x20] sm:$0xff] }
  0xe0   :  { %563 = vmatpush.bf16.msrb.mxu0 %v861_v53 }
  0xe1   :  { %v280_v6 = vrot.slane %v277_v5, 7 }
  0xe3   :  { %v281_v9 = vsel %vm267_vm6, %v276_v8, %v280_v6 }
  0xe4   :  { %v283_v10 = vsub.f32 %v205_v7, %v281_v9  ;;  %564 = vmatpush.bf16.msrb.mxu0 %v860_v56 }
  0xe6   :  { %v287_v13 = vperm.slane %v283_v10, 0  ;;  %v288_v14 = vperm.slane %v283_v10, 1 }
  0xe8   :  { %v291_v15 = vadd.f32 %v287_v13, %v284_v12  ;;  %v292_v16 = vadd.f32 %v288_v14, %v285_v11  ;;  %565 = vmatpush.bf16.msrb.mxu0 %v859_v24 }
  0xea   :  { %v293_v17 = vmul.f32 0.01, %v291_v15  ;;  %v294_v18 = vmul.f32 0.01, %v292_v16 }
  0xec   :  { %v295_v19 = vmax.f32 %v291_v15, %v293_v17  ;;  %v296_v20 = vmax.f32 %v292_v16, %v294_v18  ;;  %566 = vmatpush.bf16.msrb.mxu0 %v858_v25 }
  0xee   :  { %v297_v21 = vpack.c.bf16 %v295_v19, %v295_v19  ;;  %v298_v22 = vpack.c.bf16 %v296_v20, %v296_v20 }
  0xf0   :  { %435 = vmatmul.bf16.vlgmr.msra.gmra.mxu2 %v297_v21  ;;  %448 = vmatmul.bf16.vlgmr.msra.gmra.mxu3 %v298_v22 }
  0xf1   :  { %567 = vmatpush.bf16.msrb.mxu0 %v857_v31 }
  0xf5   :  { %568 = vmatpush.bf16.msrb.mxu0 %v856_v36  ;;  %v575_v36 = vld [vmem:[%s1098_s8] sm:$0x1] }
  0xf9   :  { %569 = vmatpush.bf16.msrb.mxu0 %v855_v43 }
 0x173   :  { %v436_v26 = vpop.f32.mrf.mxu2  ;;  %v449_v27 = vpop.f32.mrf.mxu3 }
 0x174   :  { %v450_v28 = vadd.f32 %v449_v27, %v436_v26 }
 0x176   :  { %v455_v29 = vrot.slane %v450_v28, 4  ;;  %v461_v30 = vmul.f32 %v450_v28, %v450_v28 }
 0x178   :  { %v456_v32 = vadd.f32 %v455_v29, %v450_v28  ;;  %v462_v33 = vrot.slane %v461_v30, 4 }
 0x17a   :  { %v457_v34 = vrot.slane %v456_v32, 2  ;;  %v463_v35 = vadd.f32 %v462_v33, %v461_v30 }
 0x17b   :  { %v438_v37 = vpop.f32.mrf.mxu2  ;;  %v451_v38 = vpop.f32.mrf.mxu3 }
 0x17c   :  { %v458_v39 = vadd.f32 %v457_v34, %v456_v32  ;;  %v464_v40 = vrot.slane %v463_v35, 2 }
 0x17e   :  { %v459_v41 = vrot.slane %v458_v39, 1  ;;  %v465_v42 = vadd.f32 %v464_v40, %v463_v35  ;;  %v576_v40 = vld [vmem:[%s1099_s9] sm:$0x1] }
 0x180   :  { %v460_v44 = vadd.f32 %v459_v41, %v458_v39  ;;  %v466_v45 = vrot.slane %v465_v42, 1 }
 0x182   :  { %v467_v46 = vadd.f32 %v466_v45, %v465_v42  ;;  %v468_v47 = vmul.f32 0.125, %v460_v44 }
 0x184   :  { %v469_v48 = vmul.f32 0.125, %v467_v46  ;;  %v470_v49 = vmul.f32 %v468_v47, %v468_v47 }
 0x186   :  { %v471_v50 = vsub.f32 %v469_v48, %v470_v49  ;;  %v870_v48 = vld [vmem:[%s1100_s10] ss:$0 sm:$0xff] }
 0x188   :  { %v472_v51 = vmax.f32 %v471_v50, 0.0 }
 0x18a   :  { %v473_v52 = vadd.f32 1e-05, %v472_v51 }
 0x18c   :  { %876 = vrsqrt.f32 %v473_v52  ;;  %vm480_vm9 = vweird.f32 %v473_v52 }
 0x192   :  { %v877_v54 = vpop.eup %876 }
 0x193   :  { %v475_v55 = vmul.f32 %v877_v54, %v473_v52  ;;  %vm481_vm8 = vweird.f32 %v877_v54  ;;  %v871_v52 = vld [vmem:[#allocation3] ss:$0 sm:$0xff] }
 0x194   :  { %vm482_vm10 = vmor %vm480_vm9, %vm481_vm8 }
 0x195   :  { %v476_v57 = vmul.f32 %v877_v54, %v475_v55 }
 0x197   :  { %v477_v58 = vmul.f32 0.5, %v476_v57 }
 0x199   :  { %v478_v59 = vsub.f32 1.5, %v477_v58 }
 0x19b   :  { %v479_v61 = vmul.f32 %v877_v54, %v478_v59 }
 0x19d   :  { %v483_v62 = vsel %vm482_vm10, %v877_v54, %v479_v61 }
 0x19e   :  { %v484_v63 = vmul.f32 %v483_v62, %v453_v60 }
 0x1a0   :  { %v485_v1 = vmul.f32 %v484_v63, %v468_v47  ;;  %v488_v2 = vperm.slane %v484_v63, 0 }
 0x1a2   :  { %v486_v3 = vsub.f32 %v454_v0, %v485_v1  ;;  %v490_v4 = vmul.f32 %v488_v2, %v450_v28 }
 0x1a4   :  { %v492_v5 = vperm.slane %v486_v3, 0 }
 0x1a6   :  { %v494_v6 = vadd.f32 %v492_v5, %v490_v4 }
 0x1a8   :  { %v495_v7 = vmul.f32 0.01, %v494_v6 }
 0x1aa   :  { %v496_v8 = vmax.f32 %v494_v6, %v495_v7 }
 0x1ac   :  { %v497_v9 = vpack.c.bf16 %v496_v8, %v496_v8 }
 0x1ae   :  { %570 = vmatmul.bf16.vlgmr.msrb.gmra.mxu0 %v497_v9 }
 0x22b   :  { %v571_v10 = vpop.f32.mrf.mxu0 }
 0x22c   :  { %v585_v11 = vmul.f32 %v571_v10, %v571_v10  ;;  %v578_v12 = vsel %vm577_vm11, %v571_v10, 0.0 }
 0x22d   :  { %v579_v13 = vrot.slane %v578_v12, 4 }
 0x22e   :  { %v586_v14 = vsel %vm577_vm11, %v585_v11, 0.0 }
 0x22f   :  { %v580_v15 = vadd.f32 %v579_v13, %v578_v12  ;;  %v587_v16 = vrot.slane %v586_v14, 4 }
 0x231   :  { %v581_v17 = vrot.slane %v580_v15, 2  ;;  %v588_v18 = vadd.f32 %v587_v16, %v586_v14 }
 0x233   :  { %v573_v19 = vpop.f32.mrf.mxu0  ;;  %v582_v20 = vadd.f32 %v581_v17, %v580_v15  ;;  %v589_v21 = vrot.slane %v588_v18, 2 }
 0x235   :  { %v583_v22 = vrot.slane %v582_v20, 1  ;;  %v590_v23 = vadd.f32 %v589_v21, %v588_v18 }
 0x237   :  { %v584_v53 = vadd.f32 %v583_v22, %v582_v20  ;;  %v591_v56 = vrot.slane %v590_v23, 1 }
 0x239   :  { %v592_v24 = vadd.f32 %v591_v56, %v590_v23  ;;  %v593_v25 = vmul.f32 0.125, %v584_v53 }
 0x23b   :  { %v594_v26 = vmul.f32 0.125, %v592_v24  ;;  %v595_v27 = vmul.f32 %v593_v25, %v593_v25 }
 0x23d   :  { %v596_v28 = vsub.f32 %v594_v26, %v595_v27 }
 0x23f   :  { %v597_v29 = vmax.f32 %v596_v28, 0.0 }
 0x241   :  { %v598_v30 = vadd.f32 1e-05, %v597_v29 }
 0x243   :  { %878 = vrsqrt.f32 %v598_v30  ;;  %vm605_vm13 = vweird.f32 %v598_v30 }
 0x249   :  { %v879_v31 = vpop.eup %878 }
 0x24a   :  { %v600_v32 = vmul.f32 %v879_v31, %v598_v30  ;;  %vm606_vm12 = vweird.f32 %v879_v31 }
 0x24b   :  { %vm607_vm14 = vmor %vm605_vm13, %vm606_vm12 }
 0x24c   :  { %v601_v33 = vmul.f32 %v879_v31, %v600_v32 }
 0x24e   :  { %v602_v34 = vmul.f32 0.5, %v601_v33 }
 0x250   :  { %v603_v35 = vsub.f32 1.5, %v602_v34 }
 0x252   :  { %v604_v37 = vmul.f32 %v879_v31, %v603_v35 }
 0x254   :  { %v608_v38 = vsel %vm607_vm14, %v879_v31, %v604_v37 }
 0x255   :  { %v609_v39 = vmul.f32 %v608_v38, %v575_v36 }
 0x257   :  { %v610_v41 = vmul.f32 %v609_v39, %v593_v25  ;;  %v613_v42 = vperm.slane %v609_v39, 0 }
 0x259   :  { %v611_v43 = vsub.f32 %v576_v40, %v610_v41  ;;  %v615_v44 = vmul.f32 %v613_v42, %v571_v10 }
 0x25b   :  { %v617_v45 = vperm.slane %v611_v43, 0 }
 0x25d   :  { %v619_v46 = vadd.f32 %v617_v45, %v615_v44 }
 0x25f   :  { %v620_v47 = vmul.f32 0.01, %v619_v46 }
 0x261   :  { %v621_v49 = vmax.f32 %v619_v46, %v620_v47 }
 0x263   :  { %v626_v50 = vmul.f32 %v870_v48, %v621_v49 }
 0x265   :  { %v627_v51 = vsel %vm577_vm11, %v626_v50, 0.0 }
 0x266   :  { %628 = vadd.xlane.f32.xlu0 %v627_v51 }
 0x2d9   :  { %v629_v54 = vpop.xlane.xlu0 %628 }
 0x2da   :  { %v634_v55 = vadd.f32 %v871_v52, %v629_v54 }
 0x2dc   :  { %v822_v57 = vmul.f32 -1.442695, %v634_v55 }
 0x2de   :  { %880 = vpow2.f32 %v822_v57 }
 0x2e4   :  { %v881_v58 = vpop.eup %880 }
 0x2e5   :  { %v638_v59 = vadd.f32 1.0, %v881_v58 }
 0x2e7   :  { %882 = vrcp.f32 %v638_v59  ;;  %v650_v63 = vand.u32 2147483648, %v638_v59  ;;  %v648_v1 = vand.u32 2147483647, %v638_v59  ;;  %vm644_vm0 = vweird.f32 %v638_v59 }
 0x2e9   :  { %v651_v3 = vor.u32 1.1754944e-38, %v650_v63  ;;  %vm649_vm3 = vcmp.eq.f32.partialorder %v648_v1, 8.507059e+37 }
 0x2ed   :  { %v883_v60 = vpop.eup %882 }
 0x2ee   :  { %v640_v61 = vmul.f32 %v883_v60, %v638_v59  ;;  %vm645_vm15 = vweird.f32 %v883_v60 }
 0x2ef   :  { %vm646_vm1 = vmor %vm644_vm0, %vm645_vm15 }
 0x2f0   :  { %v641_v62 = vsub.f32 1.0, %v640_v61 }
 0x2f2   :  { %v642_v0 = vmul.f32 %v883_v60, %v641_v62 }
 0x2f4   :  { %v643_v2 = vadd.f32 %v883_v60, %v642_v0 }
 0x2f6   :  { %v647_v4 = vsel %vm646_vm1, %v883_v60, %v643_v2 }
 0x2f7   :  { %v652_v5 = vsel %vm649_vm3, %v651_v3, %v647_v4 }
 0x2f8   :  { %655 = vst.msk [vmem:[%s1102_s12] sm:$0xff] %vm654_vm2, %v652_v5 }
 0x2f9   :  { %660 = vsyncpa [#allocation5], 1 }
 0x2fa   :  { %661 = vsyncpa [#allocation7], 1 }

</bundles_post_ra>
